<compile_context>
chip_gen: v6e
topology: v6e:2x2x1
jax: 0.10.0
libtpu: 0.0.40
codegen_flags: <defaults>
</compile_context>

<pallas_src>
import functools

import jax
import jax.numpy as jnp
from jax.experimental import pallas as pl
from jax.experimental.pallas import tpu as pltpu

HIDDEN_DIM = 32
LEAKY_SLOPE = 0.01   # nn.LeakyReLU default
LN_EPS = 1e-5        # nn.LayerNorm default
A_PAD = 128          # action dim padded to one full lane group
TB_MAX = 1024        # batch tile (rows per grid step); ~1 MiB/out buffer,
                     # comfortably inside v7x's 64 MiB VMEM with double buffering


def _round_up(n, m):
    return ((n + m - 1) // m) * m


def _layernorm(h, gamma, beta):
    mu = jnp.mean(h, axis=-1, keepdims=True)
    xc = h - mu
    var = jnp.mean(xc * xc, axis=-1, keepdims=True)  # biased, like nn.LayerNorm
    inv = jax.lax.rsqrt(var + LN_EPS)
    return xc * inv * gamma + beta


def _leaky_relu(h):
    return jnp.where(h > 0, h, LEAKY_SLOPE * h)


def actor_kernel(x_ref,
                 w1_ref, b1_ref, g1_ref, be1_ref,
                 w2_ref, b2_ref, g2_ref, be2_ref,
                 wpi_ref, bpi_ref,
                 out_ref, *, num_action):
    x = x_ref[...]

    # ---- layer 1: linear + leaky-relu + layernorm ----
    h = jnp.dot(x, w1_ref[...], preferred_element_type=jnp.float32) + b1_ref[...]
    h = _layernorm(_leaky_relu(h), g1_ref[...], be1_ref[...])

    # ---- layer 2: linear + leaky-relu + layernorm ----
    h = jnp.dot(h, w2_ref[...], preferred_element_type=jnp.float32) + b2_ref[...]
    h = _layernorm(_leaky_relu(h), g2_ref[...], be2_ref[...])

    # ---- policy head (lane-padded to A_PAD) ----
    logits = jnp.dot(h, wpi_ref[...], preferred_element_type=jnp.float32) + bpi_ref[...]

    # ---- log-softmax over the first `num_action` lanes only ----
    lane = jax.lax.broadcasted_iota(jnp.int32, (1, A_PAD), 1)
    valid = lane < num_action
    masked = jnp.where(valid, logits, jnp.float32(-1e30))
    m = jnp.max(masked, axis=-1, keepdims=True)
    z = logits - m
    p = jnp.where(valid, jnp.exp(z), 0.0)
    lse = jnp.log(jnp.sum(p, axis=-1, keepdims=True))
    lg = z - lse

    # single lane-dense packed store: [logits | log_softmax]
    out_ref[...] = jnp.concatenate([logits, lg], axis=-1)


def actor_nw_forward(x, params):
    """x: (B, iDim) float32.  Returns (pi_logit, log_softmax) both (B, A)."""
    B, iDim = x.shape
    H = params["w1"].shape[1]
    A = params["wpi"].shape[1]
    assert A <= A_PAD

    # batch tile: multiple of 8 sublanes, capped at TB_MAX; pad B up to a
    # whole number of tiles (zero rows are harmless and sliced away).
    tb = min(TB_MAX, _round_up(B, 8))
    B_pad = _round_up(B, tb)
    x_pad = x if B_pad == B else jnp.pad(x, ((0, B_pad - B), (0, 0)))

    # pad policy head to full lane width (zeros; kernel masks the softmax)
    wpi_pad = jnp.pad(params["wpi"], ((0, 0), (0, A_PAD - A)))
    bpi_pad = jnp.pad(params["bpi"], ((0, 0), (0, A_PAD - A)))

    row_spec = lambda shape: pl.BlockSpec(shape, lambda i: (i, 0))
    const_spec = lambda shape: pl.BlockSpec(shape, lambda i: (0, 0))

    flops = 2 * B_pad * (iDim * H + H * H + H * A_PAD) + 12 * B_pad * H
    bytes_accessed = 4 * (B_pad * iDim + B_pad * 2 * A_PAD
                          + iDim * H + H * H + H * A_PAD + 6 * H + A_PAD)

    out = pl.pallas_call(
        functools.partial(actor_kernel, num_action=A),
        out_shape=jax.ShapeDtypeStruct((B_pad, 2 * A_PAD), jnp.float32),
        grid=(B_pad // tb,),
        in_specs=[
            row_spec((tb, iDim)),
            const_spec((iDim, H)), const_spec((1, H)), const_spec((1, H)), const_spec((1, H)),
            const_spec((H, H)),    const_spec((1, H)), const_spec((1, H)), const_spec((1, H)),
            const_spec((H, A_PAD)), const_spec((1, A_PAD)),
        ],
        out_specs=row_spec((tb, 2 * A_PAD)),
        compiler_params=pltpu.CompilerParams(
            dimension_semantics=("parallel",)),
        cost_estimate=pl.CostEstimate(
            flops=flops,
            transcendentals=B_pad * (A_PAD + 2),
            bytes_accessed=bytes_accessed),
    )(
        x_pad,
        params["w1"], params["b1"], params["g1"], params["be1"],
        params["w2"], params["b2"], params["g2"], params["be2"],
        wpi_pad, bpi_pad,
    )

    pi_logit = out[:B, :A]
    lg_sm = out[:B, A_PAD:A_PAD + A]
    return pi_logit, lg_sm


def init_params(key, ip_dim, num_action, hidden=HIDDEN_DIM):
    ks = jax.random.split(key, 3)
    # Linear weights stored as (in, out); biases / LN params as (1, dim) rows.
    def lin(k, fan_in, fan_out):
        bound = 1.0 / jnp.sqrt(fan_in)
        kw, kb = jax.random.split(k)
        w = jax.random.uniform(kw, (fan_in, fan_out), jnp.float32, -bound, bound)
        b = jax.random.uniform(kb, (1, fan_out), jnp.float32, -bound, bound)
        return w, b

    w1, b1 = lin(ks[0], ip_dim, hidden)
    w2, b2 = lin(ks[1], hidden, hidden)
    wpi, bpi = lin(ks[2], hidden, num_action)
    return {
        "w1": w1, "b1": b1,
        "g1": jnp.ones((1, hidden), jnp.float32),
        "be1": jnp.zeros((1, hidden), jnp.float32),
        "w2": w2, "b2": b2,
        "g2": jnp.ones((1, hidden), jnp.float32),
        "be2": jnp.zeros((1, hidden), jnp.float32),
        "wpi": wpi, "bpi": bpi,
    }


def reference_forward(x, p):
    """Pure-JAX reference mirroring the PyTorch forward."""
    h = x @ p["w1"] + p["b1"]
    h = jnp.where(h > 0, h, LEAKY_SLOPE * h)
    h = _layernorm(h, p["g1"], p["be1"])
    h = h @ p["w2"] + p["b2"]
    h = jnp.where(h > 0, h, LEAKY_SLOPE * h)
    h = _layernorm(h, p["g2"], p["be2"])
    logits = h @ p["wpi"] + p["bpi"]
    lg = jax.nn.log_softmax(logits, axis=-1)
    return logits, lg


if __name__ == "__main__":
    key = jax.random.PRNGKey(0)
    k_x, k_p = jax.random.split(key)

    # NOTE: at tiny batch sizes like this the kernel is launch-overhead bound;
    # the gridded/parallel path pays off at RL-sized batches (>=512 rows).
    batch, ip_dim, num_action = 8, 16, 6
    x = jax.random.normal(k_x, (batch, ip_dim), jnp.float32)
    params = init_params(k_p, ip_dim, num_action)

    pi_logit, lg_sm = actor_nw_forward(x, params)
    jax.block_until_ready((pi_logit, lg_sm))

    ref_logit, ref_lg = reference_forward(x, params)
    assert pi_logit.shape == (batch, num_action)
    assert lg_sm.shape == (batch, num_action)
    assert jnp.allclose(pi_logit, ref_logit, atol=1e-4, rtol=1e-4)
    assert jnp.allclose(lg_sm, ref_lg, atol=1e-4, rtol=1e-4)

    print("KERNEL_OK")
</pallas_src>

<mosaic_0001>
module attributes {stable_mosaic.version = 11 : i64} {
  func.func @actor_kernel(%arg0: i32, %arg1: memref<8x16xf32, #tpu.memory_space<vmem>>, %arg2: memref<16x32xf32, #tpu.memory_space<vmem>>, %arg3: memref<1x32xf32, #tpu.memory_space<vmem>>, %arg4: memref<1x32xf32, #tpu.memory_space<vmem>>, %arg5: memref<1x32xf32, #tpu.memory_space<vmem>>, %arg6: memref<32x32xf32, #tpu.memory_space<vmem>>, %arg7: memref<1x32xf32, #tpu.memory_space<vmem>>, %arg8: memref<1x32xf32, #tpu.memory_space<vmem>>, %arg9: memref<1x32xf32, #tpu.memory_space<vmem>>, %arg10: memref<32x128xf32, #tpu.memory_space<vmem>>, %arg11: memref<1x128xf32, #tpu.memory_space<vmem>>, %arg12: memref<8x256xf32, #tpu.memory_space<vmem>>) attributes {dimension_semantics = [#tpu.dimension_semantics<parallel>], iteration_bounds = array<i64: 1>, scalar_prefetch = 0 : i64, scratch_operands = 0 : i64, tpu.core_type = #tpu.core_type<tc>, window_params = [{transform_indices = @transform_0, window_bounds = array<i64: 8, 16>}, {pipeline_mode = #tpu.pipeline_mode<synchronous>, transform_indices = @transform_1, window_bounds = array<i64: 16, 32>}, {pipeline_mode = #tpu.pipeline_mode<synchronous>, transform_indices = @transform_2, window_bounds = array<i64: 1, 32>}, {pipeline_mode = #tpu.pipeline_mode<synchronous>, transform_indices = @transform_3, window_bounds = array<i64: 1, 32>}, {pipeline_mode = #tpu.pipeline_mode<synchronous>, transform_indices = @transform_4, window_bounds = array<i64: 1, 32>}, {pipeline_mode = #tpu.pipeline_mode<synchronous>, transform_indices = @transform_5, window_bounds = array<i64: 32, 32>}, {pipeline_mode = #tpu.pipeline_mode<synchronous>, transform_indices = @transform_6, window_bounds = array<i64: 1, 32>}, {pipeline_mode = #tpu.pipeline_mode<synchronous>, transform_indices = @transform_7, window_bounds = array<i64: 1, 32>}, {pipeline_mode = #tpu.pipeline_mode<synchronous>, transform_indices = @transform_8, window_bounds = array<i64: 1, 32>}, {pipeline_mode = #tpu.pipeline_mode<synchronous>, transform_indices = @transform_9, window_bounds = array<i64: 32, 128>}, {pipeline_mode = #tpu.pipeline_mode<synchronous>, transform_indices = @transform_10, window_bounds = array<i64: 1, 128>}, {transform_indices = @transform_11, window_bounds = array<i64: 8, 256>}]} {
    %c0 = arith.constant 0 : index
    %c0_0 = arith.constant 0 : index
    %0 = vector.load %arg1[%c0, %c0_0] : memref<8x16xf32, #tpu.memory_space<vmem>>, vector<8x16xf32>
    %c0_1 = arith.constant 0 : index
    %c0_2 = arith.constant 0 : index
    %1 = vector.load %arg2[%c0_1, %c0_2] : memref<16x32xf32, #tpu.memory_space<vmem>>, vector<16x32xf32>
    %cst = arith.constant dense<0.000000e+00> : vector<8x32xf32>
    %2 = tpu.matmul %0, %1, %cst {dimension_numbers = #tpu.dot_dimension_numbers<[1], [0], [0], [1], [0, 0, 1, 1], [], []>} : vector<8x16xf32>, vector<16x32xf32>, vector<8x32xf32> -> vector<8x32xf32>
    %c0_3 = arith.constant 0 : index
    %c0_4 = arith.constant 0 : index
    %3 = vector.load %arg3[%c0_3, %c0_4] : memref<1x32xf32, #tpu.memory_space<vmem>>, vector<1x32xf32>
    %4 = vector.broadcast %3 : vector<1x32xf32> to vector<8x32xf32>
    %5 = arith.addf %2, %4 : vector<8x32xf32>
    %cst_5 = arith.constant 0.000000e+00 : f32
    %6 = vector.broadcast %cst_5 : f32 to vector<8x32xf32>
    %7 = arith.cmpf ogt, %5, %6 : vector<8x32xf32>
    %cst_6 = arith.constant 0.00999999977 : f32
    %8 = vector.broadcast %cst_6 : f32 to vector<8x32xf32>
    %9 = arith.mulf %8, %5 : vector<8x32xf32>
    %10 = arith.select %7, %5, %9 : vector<8x32xi1>, vector<8x32xf32>
    %c0_7 = arith.constant 0 : index
    %c0_8 = arith.constant 0 : index
    %11 = vector.load %arg4[%c0_7, %c0_8] : memref<1x32xf32, #tpu.memory_space<vmem>>, vector<1x32xf32>
    %c0_9 = arith.constant 0 : index
    %c0_10 = arith.constant 0 : index
    %12 = vector.load %arg5[%c0_9, %c0_10] : memref<1x32xf32, #tpu.memory_space<vmem>>, vector<1x32xf32>
    %cst_11 = arith.constant dense<0.000000e+00> : vector<8xf32>
    %13 = vector.multi_reduction <add>, %10, %cst_11 [1] : vector<8x32xf32> to vector<8xf32>
    %14 = vector.shape_cast %13 : vector<8xf32> to vector<8x1xf32>
    %cst_12 = arith.constant 3.200000e+01 : f32
    %15 = vector.broadcast %cst_12 : f32 to vector<8x1xf32>
    %16 = arith.divf %14, %15 : vector<8x1xf32>
    %17 = vector.broadcast %16 : vector<8x1xf32> to vector<8x32xf32>
    %18 = arith.subf %10, %17 : vector<8x32xf32>
    %19 = arith.mulf %18, %18 : vector<8x32xf32>
    %cst_13 = arith.constant dense<0.000000e+00> : vector<8xf32>
    %20 = vector.multi_reduction <add>, %19, %cst_13 [1] : vector<8x32xf32> to vector<8xf32>
    %21 = vector.shape_cast %20 : vector<8xf32> to vector<8x1xf32>
    %cst_14 = arith.constant 3.200000e+01 : f32
    %22 = vector.broadcast %cst_14 : f32 to vector<8x1xf32>
    %23 = arith.divf %21, %22 : vector<8x1xf32>
    %cst_15 = arith.constant 9.99999974E-6 : f32
    %24 = vector.broadcast %cst_15 : f32 to vector<8x1xf32>
    %25 = arith.addf %23, %24 : vector<8x1xf32>
    %26 = math.rsqrt %25 : vector<8x1xf32>
    %27 = vector.broadcast %26 : vector<8x1xf32> to vector<8x32xf32>
    %28 = arith.mulf %18, %27 : vector<8x32xf32>
    %29 = vector.broadcast %11 : vector<1x32xf32> to vector<8x32xf32>
    %30 = arith.mulf %28, %29 : vector<8x32xf32>
    %31 = vector.broadcast %12 : vector<1x32xf32> to vector<8x32xf32>
    %32 = arith.addf %30, %31 : vector<8x32xf32>
    %c0_16 = arith.constant 0 : index
    %c0_17 = arith.constant 0 : index
    %33 = vector.load %arg6[%c0_16, %c0_17] : memref<32x32xf32, #tpu.memory_space<vmem>>, vector<32x32xf32>
    %cst_18 = arith.constant dense<0.000000e+00> : vector<8x32xf32>
    %34 = tpu.matmul %32, %33, %cst_18 {dimension_numbers = #tpu.dot_dimension_numbers<[1], [0], [0], [1], [0, 0, 1, 1], [], []>} : vector<8x32xf32>, vector<32x32xf32>, vector<8x32xf32> -> vector<8x32xf32>
    %c0_19 = arith.constant 0 : index
    %c0_20 = arith.constant 0 : index
    %35 = vector.load %arg7[%c0_19, %c0_20] : memref<1x32xf32, #tpu.memory_space<vmem>>, vector<1x32xf32>
    %36 = vector.broadcast %35 : vector<1x32xf32> to vector<8x32xf32>
    %37 = arith.addf %34, %36 : vector<8x32xf32>
    %cst_21 = arith.constant 0.000000e+00 : f32
    %38 = vector.broadcast %cst_21 : f32 to vector<8x32xf32>
    %39 = arith.cmpf ogt, %37, %38 : vector<8x32xf32>
    %cst_22 = arith.constant 0.00999999977 : f32
    %40 = vector.broadcast %cst_22 : f32 to vector<8x32xf32>
    %41 = arith.mulf %40, %37 : vector<8x32xf32>
    %42 = arith.select %39, %37, %41 : vector<8x32xi1>, vector<8x32xf32>
    %c0_23 = arith.constant 0 : index
    %c0_24 = arith.constant 0 : index
    %43 = vector.load %arg8[%c0_23, %c0_24] : memref<1x32xf32, #tpu.memory_space<vmem>>, vector<1x32xf32>
    %c0_25 = arith.constant 0 : index
    %c0_26 = arith.constant 0 : index
    %44 = vector.load %arg9[%c0_25, %c0_26] : memref<1x32xf32, #tpu.memory_space<vmem>>, vector<1x32xf32>
    %cst_27 = arith.constant dense<0.000000e+00> : vector<8xf32>
    %45 = vector.multi_reduction <add>, %42, %cst_27 [1] : vector<8x32xf32> to vector<8xf32>
    %46 = vector.shape_cast %45 : vector<8xf32> to vector<8x1xf32>
    %cst_28 = arith.constant 3.200000e+01 : f32
    %47 = vector.broadcast %cst_28 : f32 to vector<8x1xf32>
    %48 = arith.divf %46, %47 : vector<8x1xf32>
    %49 = vector.broadcast %48 : vector<8x1xf32> to vector<8x32xf32>
    %50 = arith.subf %42, %49 : vector<8x32xf32>
    %51 = arith.mulf %50, %50 : vector<8x32xf32>
    %cst_29 = arith.constant dense<0.000000e+00> : vector<8xf32>
    %52 = vector.multi_reduction <add>, %51, %cst_29 [1] : vector<8x32xf32> to vector<8xf32>
    %53 = vector.shape_cast %52 : vector<8xf32> to vector<8x1xf32>
    %cst_30 = arith.constant 3.200000e+01 : f32
    %54 = vector.broadcast %cst_30 : f32 to vector<8x1xf32>
    %55 = arith.divf %53, %54 : vector<8x1xf32>
    %cst_31 = arith.constant 9.99999974E-6 : f32
    %56 = vector.broadcast %cst_31 : f32 to vector<8x1xf32>
    %57 = arith.addf %55, %56 : vector<8x1xf32>
    %58 = math.rsqrt %57 : vector<8x1xf32>
    %59 = vector.broadcast %58 : vector<8x1xf32> to vector<8x32xf32>
    %60 = arith.mulf %50, %59 : vector<8x32xf32>
    %61 = vector.broadcast %43 : vector<1x32xf32> to vector<8x32xf32>
    %62 = arith.mulf %60, %61 : vector<8x32xf32>
    %63 = vector.broadcast %44 : vector<1x32xf32> to vector<8x32xf32>
    %64 = arith.addf %62, %63 : vector<8x32xf32>
    %c0_32 = arith.constant 0 : index
    %c0_33 = arith.constant 0 : index
    %65 = vector.load %arg10[%c0_32, %c0_33] : memref<32x128xf32, #tpu.memory_space<vmem>>, vector<32x128xf32>
    %cst_34 = arith.constant dense<0.000000e+00> : vector<8x128xf32>
    %66 = tpu.matmul %64, %65, %cst_34 {dimension_numbers = #tpu.dot_dimension_numbers<[1], [0], [0], [1], [0, 0, 1, 1], [], []>} : vector<8x32xf32>, vector<32x128xf32>, vector<8x128xf32> -> vector<8x128xf32>
    %c0_35 = arith.constant 0 : index
    %c0_36 = arith.constant 0 : index
    %67 = vector.load %arg11[%c0_35, %c0_36] : memref<1x128xf32, #tpu.memory_space<vmem>>, vector<1x128xf32>
    %68 = vector.broadcast %67 : vector<1x128xf32> to vector<8x128xf32>
    %69 = arith.addf %66, %68 : vector<8x128xf32>
    %70 = tpu.iota {dimensions = array<i32: 1>} : vector<1x128xi32>
    %c6_i32 = arith.constant 6 : i32
    %71 = vector.broadcast %c6_i32 : i32 to vector<1x128xi32>
    %72 = arith.cmpi slt, %70, %71 : vector<1x128xi32>
    %cst_37 = arith.constant -1.000000e+30 : f32
    %73 = vector.shape_cast %72 : vector<1x128xi1> to vector<1x128xi1>
    %74 = vector.broadcast %73 : vector<1x128xi1> to vector<8x128xi1>
    %75 = vector.broadcast %cst_37 : f32 to vector<8x128xf32>
    %76 = arith.select %74, %69, %75 : vector<8x128xi1>, vector<8x128xf32>
    %cst_38 = arith.constant dense<0xFF800000> : vector<8xf32>
    %77 = vector.multi_reduction <maximumf>, %76, %cst_38 [1] : vector<8x128xf32> to vector<8xf32>
    %78 = vector.shape_cast %77 : vector<8xf32> to vector<8x1xf32>
    %79 = vector.broadcast %78 : vector<8x1xf32> to vector<8x128xf32>
    %80 = arith.subf %69, %79 : vector<8x128xf32>
    %81 = math.exp %80 : vector<8x128xf32>
    %cst_39 = arith.constant 0.000000e+00 : f32
    %82 = vector.shape_cast %72 : vector<1x128xi1> to vector<1x128xi1>
    %83 = vector.broadcast %82 : vector<1x128xi1> to vector<8x128xi1>
    %84 = vector.broadcast %cst_39 : f32 to vector<8x128xf32>
    %85 = arith.select %83, %81, %84 : vector<8x128xi1>, vector<8x128xf32>
    %cst_40 = arith.constant dense<0.000000e+00> : vector<8xf32>
    %86 = vector.multi_reduction <add>, %85, %cst_40 [1] : vector<8x128xf32> to vector<8xf32>
    %87 = vector.shape_cast %86 : vector<8xf32> to vector<8x1xf32>
    %88 = math.log %87 : vector<8x1xf32>
    %89 = vector.broadcast %88 : vector<8x1xf32> to vector<8x128xf32>
    %90 = arith.subf %80, %89 : vector<8x128xf32>
    %91 = tpu.concatenate %69, %90 in 1 : vector<8x128xf32>, vector<8x128xf32> -> vector<8x256xf32>
    %c0_41 = arith.constant 0 : index
    %c0_42 = arith.constant 0 : index
    %92 = vector.load %arg12[%c0_41, %c0_42] : memref<8x256xf32, #tpu.memory_space<vmem>>, vector<8x256xf32>
    tpu.vector_store %arg12[%c0_41, %c0_42], %91 {strides = array<i32>} : memref<8x256xf32, #tpu.memory_space<vmem>>, vector<8x256xf32>,
    return
  }
  func.func @transform_0(%arg0: i32) -> (i32, i32) {
    %c0_i32 = arith.constant 0 : i32
    %c0_i32_0 = arith.constant 0 : i32
    return %arg0, %c0_i32 : i32, i32
  }
  func.func @transform_1(%arg0: i32) -> (i32, i32) {
    %c0_i32 = arith.constant 0 : i32
    %c0_i32_0 = arith.constant 0 : i32
    %c0_i32_1 = arith.constant 0 : i32
    return %c0_i32, %c0_i32_0 : i32, i32
  }
  func.func @transform_2(%arg0: i32) -> (i32, i32) {
    %c0_i32 = arith.constant 0 : i32
    %c0_i32_0 = arith.constant 0 : i32
    %c0_i32_1 = arith.constant 0 : i32
    return %c0_i32, %c0_i32_0 : i32, i32
  }
  func.func @transform_3(%arg0: i32) -> (i32, i32) {
    %c0_i32 = arith.constant 0 : i32
    %c0_i32_0 = arith.constant 0 : i32
    %c0_i32_1 = arith.constant 0 : i32
    return %c0_i32, %c0_i32_0 : i32, i32
  }
  func.func @transform_4(%arg0: i32) -> (i32, i32) {
    %c0_i32 = arith.constant 0 : i32
    %c0_i32_0 = arith.constant 0 : i32
    %c0_i32_1 = arith.constant 0 : i32
    return %c0_i32, %c0_i32_0 : i32, i32
  }
  func.func @transform_5(%arg0: i32) -> (i32, i32) {
    %c0_i32 = arith.constant 0 : i32
    %c0_i32_0 = arith.constant 0 : i32
    %c0_i32_1 = arith.constant 0 : i32
    return %c0_i32, %c0_i32_0 : i32, i32
  }
  func.func @transform_6(%arg0: i32) -> (i32, i32) {
    %c0_i32 = arith.constant 0 : i32
    %c0_i32_0 = arith.constant 0 : i32
    %c0_i32_1 = arith.constant 0 : i32
    return %c0_i32, %c0_i32_0 : i32, i32
  }
  func.func @transform_7(%arg0: i32) -> (i32, i32) {
    %c0_i32 = arith.constant 0 : i32
    %c0_i32_0 = arith.constant 0 : i32
    %c0_i32_1 = arith.constant 0 : i32
    return %c0_i32, %c0_i32_0 : i32, i32
  }
  func.func @transform_8(%arg0: i32) -> (i32, i32) {
    %c0_i32 = arith.constant 0 : i32
    %c0_i32_0 = arith.constant 0 : i32
    %c0_i32_1 = arith.constant 0 : i32
    return %c0_i32, %c0_i32_0 : i32, i32
  }
  func.func @transform_9(%arg0: i32) -> (i32, i32) {
    %c0_i32 = arith.constant 0 : i32
    %c0_i32_0 = arith.constant 0 : i32
    %c0_i32_1 = arith.constant 0 : i32
    return %c0_i32, %c0_i32_0 : i32, i32
  }
  func.func @transform_10(%arg0: i32) -> (i32, i32) {
    %c0_i32 = arith.constant 0 : i32
    %c0_i32_0 = arith.constant 0 : i32
    %c0_i32_1 = arith.constant 0 : i32
    return %c0_i32, %c0_i32_0 : i32, i32
  }
  func.func @transform_11(%arg0: i32) -> (i32, i32) {
    %c0_i32 = arith.constant 0 : i32
    %c0_i32_0 = arith.constant 0 : i32
    return %arg0, %c0_i32 : i32, i32
  }
}

</mosaic_0001>

<bundles_post_ra>
// kernel: tpu_custom_call.1
= control target key start
LH: loop header
LB: loop body
LE: loop exit
PB: predicated region body
PF: predicated region fallthrough
CT: control target
= control target key end

     0   :  { %16 = vsyncpa [#allocation3], 0  ;;  %s756_s0 = inlined_call_operand.hbm [shape: f32[8,16], index: 0, kind: input, shape index: {}]   ;;  %s757_s1 = inlined_call_operand.hbm [shape: f32[16,32], index: 1, kind: input, shape index: {}]   ;;  %s758_s2 = inlined_call_operand.vmem [shape: f32[1,32], index: 2, kind: input, shape index: {}]   ;;  %s759_s3 = inlined_call_operand.vmem [shape: f32[1,32], index: 3, kind: input, shape index: {}]   ;;  %s760_s4 = inlined_call_operand.vmem [shape: f32[1,32], index: 4, kind: input, shape index: {}]   ;;  %s761_s5 = inlined_call_operand.hbm [shape: f32[32,32], index: 5, kind: input, shape index: {}]   ;;  %s762_s6 = inlined_call_operand.vmem [shape: f32[1,32], index: 6, kind: input, shape index: {}]   ;;  %s763_s7 = inlined_call_operand.vmem [shape: f32[1,32], index: 7, kind: input, shape index: {}]   ;;  %s764_s8 = inlined_call_operand.vmem [shape: f32[1,32], index: 8, kind: input, shape index: {}]   ;;  %s765_s9 = inlined_call_operand.hbm [shape: f32[32,128], index: 9, kind: input, shape index: {}]   ;;  %s766_s10 = inlined_call_operand.vmem [shape: f32[1,128], index: 10, kind: input, shape index: {}]   ;;  %s767_s11 = inlined_call_operand.hbm [shape: f32[8,256], index: 11, kind: output, shape index: {}]  }
   0x1   :  { %17 = vsyncpa [#allocation6], 0 }
   0x2   :  { %18 = vsyncpa [#allocation9], 0 }
   0x3   :  { %19 = vsyncpa [#allocation4], 0  ;;  %s623_s17 = smov [#allocation5]  }
   0x4   :  { %s35_s18 = sshll.u32 %s623_s17, 4  ;;  %s36_s18 = int_to_ptr.vmem [resolvable:$true] %s35_s18 }
   0x5   :  { %s523_s19 = scalar_lea.vmem %s36_s18, 256  ;;  %p528_p1 = scmp.lt.s32.totalorder %s36_s18, %s36_s18 }
   0x6   :  { %p524_p0 = scmp.ne.s32.totalorder %s36_s18, %s523_s19  ;;  %p529_p2 = scmp.lt.s32.totalorder %s523_s19, %s523_s19 }
   0x8   :  { %p530_p3 = por %p529_p2, %p528_p1 }
   0xa   :  { %p531_p4 = pnand %p530_p3, %p524_p0 }
   0xc   :  { %534 = shalt.err (!%p531_p4)
}
   0xd   :  { %s624_s20 = smov 128   ;;  %s625_s21 = smov 8  }
   0xe   :  { %41 = dma.hbm_to_vmem [thread:$0]  %s757_s1, 256, %s36_s18, [#allocation6], %s624_s20, %s624_s20, %s625_s21  }
   0xf   :  { %s626_s24 = smov [#allocation2]   ;;  %s627_s26 = smov [#allocation7]  }
  0x10   :  { %s26_s25 = sshll.u32 %s626_s24, 4  ;;  %s53_s27 = sshll.u32 %s627_s26, 4  ;;  %s27_s25 = int_to_ptr.vmem [resolvable:$true] %s26_s25  ;;  %s54_s27 = int_to_ptr.vmem [resolvable:$true] %s53_s27 }
  0x11   :  { %s543_s28 = scalar_lea.vmem %s27_s25, 128  ;;  %p548_p6 = scmp.lt.s32.totalorder %s27_s25, %s27_s25 }
  0x12   :  { %p544_p5 = scmp.ne.s32.totalorder %s27_s25, %s543_s28  ;;  %p549_p7 = scmp.lt.s32.totalorder %s543_s28, %s543_s28 }
  0x14   :  { %p550_p8 = por %p549_p7, %p548_p6 }
  0x16   :  { %p551_p9 = pnand %p550_p8, %p544_p5 }
  0x18   :  { %554 = shalt.err (!%p551_p9)
}
  0x19   :  { %29 = dma.hbm_to_vmem [thread:$0]  %s756_s0, 128, %s27_s25, [#allocation3]  }
  0x1a   :  { %s563_s12 = scalar_lea.vmem %s54_s27, 512  ;;  %p568_p11 = scmp.lt.s32.totalorder %s54_s27, %s54_s27 }
  0x1b   :  { %p564_p10 = scmp.ne.s32.totalorder %s54_s27, %s563_s12  ;;  %p569_p12 = scmp.lt.s32.totalorder %s563_s12, %s563_s12 }
  0x1d   :  { %p570_p13 = por %p569_p12, %p568_p11 }
  0x1f   :  { %p571_p0 = pnand %p570_p13, %p564_p10 }
  0x21   :  { %574 = shalt.err (!%p571_p0)
}
  0x22   :  { %59 = dma.hbm_to_vmem [thread:$0]  %s761_s5, 512, %s54_s27, [#allocation6], %s624_s20, %s624_s20, %s625_s21  }
  0x23   :  { %s628_s14 = smov [#allocation8]  }
  0x24   :  { %s71_s15 = sshll.u32 %s628_s14, 4  ;;  %s72_s15 = int_to_ptr.vmem [resolvable:$true] %s71_s15 }
  0x25   :  { %s583_s16 = scalar_lea.vmem %s72_s15, 512  ;;  %p588_p2 = scmp.lt.s32.totalorder %s72_s15, %s72_s15 }
  0x26   :  { %p584_p1 = scmp.ne.s32.totalorder %s72_s15, %s583_s16  ;;  %p589_p3 = scmp.lt.s32.totalorder %s583_s16, %s583_s16 }
  0x28   :  { %p590_p4 = por %p589_p3, %p588_p2 }
  0x2a   :  { %p591_p5 = pnand %p590_p4, %p584_p1 }
  0x2c   :  { %594 = shalt.err (!%p591_p5)
}
  0x2d   :  { %77 = dma.hbm_to_vmem [thread:$0]  %s765_s9, 512, %s72_s15, [#allocation9], %s624_s20, %s624_s20, %s625_s21  }
  0x2e   :  { %615 = dma.done.wait [#allocation3], 128  }
  0x2f   :  { %616 = vsyncadd [#allocation3], 4294967168 }
  0x30   :  { %617 = dma.done.wait [#allocation6], 768  }
  0x31   :  { %618 = vsyncadd [#allocation6], 4294966528 }
  0x32   :  { %619 = dma.done.wait [#allocation9], 512  }
  0x33   :  { %620 = vsyncadd [#allocation9], 4294966784  ;;  %v629_v0 = vmov 0.0   ;;  %vm630_vm0 = vmmov 0   ;;  %v94_v1 = vld [vmem:[#allocation5 + $0x8] sm:$0xff]  ;;  %v93_v2 = vld [vmem:[#allocation5] sm:$0xff]  ;;  %v410_v54 = vlaneseq }
  0x34   :  { %469 = vmatprep.subr.mxu0 %v629_v0  ;;  %473 = vmatprep.mubr.msk.f32.mxu0 %vm630_vm0, %v629_v0  ;;  %v92_v3 = vld [vmem:[#allocation2] sm:$0xff]  ;;  %vm102_vm1 = vcmask 130048   ;;  %vm181_vm3 = vcmask 261120   ;;  %v213_v16 = vld [vmem:[#allocation7 + $0x18] sm:$0xff]  ;;  %v212_v17 = vld [vmem:[#allocation7 + $0x10] sm:$0xff] }
  0x35   :  { %476 = vmatprep.subr.mxu1 %v629_v0  ;;  %484 = vmatprep.mubr.msk.f32.mxu1 %vm630_vm0, %v629_v0  ;;  %v446_v4 = vld [vmem:[%s758_s2] ss:$0 sm:$0xff]  ;;  %v210_v19 = vld [vmem:[#allocation7] sm:$0xff]  ;;  %v329_v41 = vld [vmem:[#allocation8 + $0x18] sm:$0xff]  ;;  %v411_v55 = vand.u32 127, %v410_v54 }
  0x36   :  { %470 = vmatpush3.msra.mxu0 %v94_v1  ;;  %477 = vmatpush3.msra.mxu1 %v213_v16  ;;  %v211_v18 = vld [vmem:[#allocation7 + $0x8] sm:$0xff]  ;;  %v328_v42 = vld [vmem:[#allocation8 + $0x10] sm:$0xff]  ;;  %v326_v44 = vld [vmem:[#allocation8] sm:$0xff] }
  0x37   :  { %471 = vmatprep.subr.mxu0 %v629_v0  ;;  %478 = vmatprep.subr.mxu1 %v629_v0  ;;  %v448_v24 = vld [vmem:[%s759_s3] ss:$0 sm:$0xff]  ;;  %vm412_vm5 = vcmp.lt.s32.totalorder %v411_v55, 6 }
  0x38   :  { %472 = vmatpush3.msra.mxu0 %v93_v2  ;;  %479 = vmatpush3.msra.mxu1 %v212_v17  ;;  %v449_v26 = vld [vmem:[%s760_s4] ss:$0 sm:$0xff] }
  0x39   :  { %474 = vmatmul.mubr.msk.f32.vlgmr.msra.gmra.mxu0 %vm102_vm1, %v92_v3  ;;  %487 = vmatprep.subr.mxu0 %v629_v0  ;;  %v450_v29 = vld [vmem:[%s762_s6] ss:$0 sm:$0xff] }
  0x3a   :  { %495 = vmatprep.mubr.msk.f32.mxu0 %vm630_vm0, %v629_v0  ;;  %480 = vmatprep.subr.mxu1 %v629_v0  ;;  %v327_v43 = vld [vmem:[#allocation8 + $0x8] sm:$0xff] }
  0x3b   :  { %481 = vmatpush3.msra.mxu1 %v211_v18  ;;  %488 = vmatpush3.msra.mxu0 %v329_v41  ;;  %v452_v49 = vld [vmem:[%s763_s7] ss:$0 sm:$0xff]  ;;  %s631_s7 = smov [#allocation10]  }
  0x3c   :  { %482 = vmatprep.subr.mxu1 %v629_v0  ;;  %489 = vmatprep.subr.mxu0 %v629_v0  ;;  %v453_v51 = vld [vmem:[%s764_s8] ss:$0 sm:$0xff]  ;;  %s435_s8 = sshll.u32 %s631_s7, 4  ;;  %s436_s8 = int_to_ptr.vmem [resolvable:$true] %s435_s8 }
  0x3d   :  { %483 = vmatpush3.msra.mxu1 %v210_v19  ;;  %490 = vmatpush3.msra.mxu0 %v328_v42  ;;  %v454_v56 = vld [vmem:[%s766_s10] ss:$0 sm:$0xff]  ;;  %s595_s10 = scalar_lea.vmem %s436_s8, 256  ;;  %p600_p7 = scmp.lt.s32.totalorder %s436_s8, %s436_s8 }
  0x3e   :  { %491 = vmatprep.subr.mxu0 %v629_v0  ;;  %p596_p6 = scmp.ne.s32.totalorder %s436_s8, %s595_s10  ;;  %p601_p8 = scmp.lt.s32.totalorder %s595_s10, %s595_s10 }
  0x3f   :  { %492 = vmatpush3.msra.mxu0 %v327_v43 }
  0x40   :  { %493 = vmatprep.subr.mxu0 %v629_v0  ;;  %p602_p9 = por %p601_p8, %p600_p7 }
  0x41   :  { %494 = vmatpush3.msra.mxu0 %v326_v44 }
  0x42   :  { %p603_p10 = pnand %p602_p9, %p596_p6 }
  0xf9   :  { %v172_v5 = vpop.f32.mrf.mxu0 }
  0xfa   :  { %v173_v6 = vadd.f32 %v446_v4, %v172_v5 }
  0xfb   :  { %v475_v7 = vpop.f32.mrf.mxu0 }
  0xfc   :  { %v177_v8 = vmul.f32 0.01, %v173_v6  ;;  %vm176_vm2 = vcmp.gt.f32.partialorder %v173_v6, 0.0 }
  0xfe   :  { %v178_v9 = vsel %vm176_vm2, %v173_v6, %v177_v8 }
  0xff   :  { %v182_v10 = vsel %vm181_vm3, %v178_v9, 0.0 }
 0x100   :  { %183 = vadd.xlane.f32.xlu0 %v182_v10 }
 0x189   :  { %v184_v11 = vpop.xlane.xlu0 %183 }
 0x18a   :  { %v186_v12 = vmul.f32 0.03125, %v184_v11 }
 0x18c   :  { %v187_v13 = vsub.f32 %v178_v9, %v186_v12 }
 0x18e   :  { %v188_v14 = vmul.f32 %v187_v13, %v187_v13 }
 0x190   :  { %v189_v15 = vsel %vm181_vm3, %v188_v14, 0.0 }
 0x191   :  { %190 = vadd.xlane.f32.xlu0 %v189_v15 }
 0x21a   :  { %v191_v20 = vpop.xlane.xlu0 %190 }
 0x21b   :  { %v192_v21 = vmul.f32 0.03125, %v191_v20 }
 0x21d   :  { %v193_v22 = vadd.f32 1e-05, %v192_v21 }
 0x21f   :  { %507 = vrsqrt.f32 %v193_v22 }
 0x22c   :  { %v508_v23 = vpop.eup %507 }
 0x22d   :  { %v195_v25 = vmul.f32 %v508_v23, %v187_v13 }
 0x22f   :  { %v202_v27 = vmul.f32 %v448_v24, %v195_v25 }
 0x231   :  { %v209_v28 = vadd.f32 %v449_v26, %v202_v27 }
 0x233   :  { %485 = vmatmul.mubr.msk.f32.vlgmr.msra.gmra.mxu1 %vm181_vm3, %v209_v28 }
 0x2f3   :  { %v290_v30 = vpop.f32.mrf.mxu1 }
 0x2f4   :  { %v291_v31 = vadd.f32 %v450_v29, %v290_v30 }
 0x2f5   :  { %v486_v32 = vpop.f32.mrf.mxu1 }
 0x2f6   :  { %v295_v33 = vmul.f32 0.01, %v291_v31  ;;  %vm294_vm4 = vcmp.gt.f32.partialorder %v291_v31, 0.0 }
 0x2f8   :  { %v296_v34 = vsel %vm294_vm4, %v291_v31, %v295_v33 }
 0x2f9   :  { %v299_v35 = vsel %vm181_vm3, %v296_v34, 0.0 }
 0x2fa   :  { %300 = vadd.xlane.f32.xlu1 %v299_v35 }
 0x383   :  { %v301_v36 = vpop.xlane.xlu1 %300 }
 0x384   :  { %v302_v37 = vmul.f32 0.03125, %v301_v36 }
 0x386   :  { %v303_v38 = vsub.f32 %v296_v34, %v302_v37 }
 0x388   :  { %v304_v39 = vmul.f32 %v303_v38, %v303_v38 }
 0x38a   :  { %v305_v40 = vsel %vm181_vm3, %v304_v39, 0.0 }
 0x38b   :  { %306 = vadd.xlane.f32.xlu1 %v305_v40 }
 0x414   :  { %v307_v45 = vpop.xlane.xlu1 %306 }
 0x415   :  { %v308_v46 = vmul.f32 0.03125, %v307_v45 }
 0x417   :  { %v309_v47 = vadd.f32 1e-05, %v308_v46 }
 0x419   :  { %509 = vrsqrt.f32 %v309_v47 }
 0x426   :  { %v510_v48 = vpop.eup %509 }
 0x427   :  { %v311_v50 = vmul.f32 %v510_v48, %v303_v38 }
 0x429   :  { %v318_v52 = vmul.f32 %v452_v49, %v311_v50 }
 0x42b   :  { %v325_v53 = vadd.f32 %v453_v51, %v318_v52 }
 0x42d   :  { %496 = vmatmul.mubr.msk.f32.vlgmr.msra.gmra.mxu0 %vm181_vm3, %v325_v53 }
 0x4ed   :  { %v406_v57 = vpop.f32.mrf.mxu0 }
 0x4ee   :  { %v407_v58 = vadd.f32 %v454_v56, %v406_v57 }
 0x4ef   :  { %v497_v59 = vpop.f32.mrf.mxu0 }
 0x4f0   :  { %427 = vst [vmem:[#allocation10] sm:$0xff] %v407_v58  ;;  %v415_v60 = vsel %vm412_vm5, %v407_v58, -1e+30 }
 0x4f1   :  { %416 = vmax.xlane.f32.xlu0 %v415_v60 }
 0x57a   :  { %v417_v61 = vpop.xlane.xlu0 %416 }
 0x57b   :  { %v418_v62 = vsub.f32 %v407_v58, %v417_v61 }
 0x57d   :  { %v419_v63 = vmul.f32 1.442695, %v418_v62 }
 0x57f   :  { %511 = vpow2.f32 %v419_v63 }
 0x58c   :  { %v512_v0 = vpop.eup %511 }
 0x58d   :  { %v421_v1 = vsel %vm412_vm5, %v512_v0, 0.0 }
 0x58e   :  { %422 = vadd.xlane.f32.xlu1 %v421_v1 }
 0x617   :  { %v423_v2 = vpop.xlane.xlu1 %422 }
 0x618   :  { %513 = vlog2.f32 %v423_v2 }
 0x625   :  { %v514_v3 = vpop.eup %513 }
 0x626   :  { %v425_v4 = vmul.f32 0.6931472, %v514_v3 }
 0x628   :  { %v426_v5 = vsub.f32 %v418_v62, %v425_v4 }
 0x62a   :  { %428 = vst [vmem:[#allocation10 + $0x8] sm:$0xff] %v426_v5 }
 0x62b   :  { %606 = shalt.err (!%p603_p10)
}
 0x62c   :  { %438 = dma.vmem_to_hbm [thread:$0]  %s436_s8, 256, %s767_s11, [#allocation4]  }
 0x62d   :  { %621 = dma.done.wait [#allocation4], 256  }
 0x62e   :  { %622 = vsyncadd [#allocation4], 4294967040 }
 0x62f   :  { %442 = vsyncpa [#allocation3], 1 }
 0x630   :  { %443 = vsyncpa [#allocation6], 1 }
 0x631   :  { %444 = vsyncpa [#allocation9], 1 }
 0x632   :  { %445 = vsyncpa [#allocation4], 1 }

</bundles_post_ra>
